<compile_context>
chip_gen: v6e
topology: v6e:2x2x1
jax: 0.10.0
libtpu: 0.0.40
codegen_flags: <defaults>
</compile_context>

<pallas_src>
import jax
import jax.numpy as jnp
from jax.experimental import pallas as pl
from jax.experimental.pallas import tpu as pltpu


def _zero_flag_kernel(flag_ref):
    # torch.tensor(0) analogue: one scalar store to SMEM. This is the only
    # work NoLLM_Backbone.forward implies beyond returning its input unchanged.
    flag_ref[0] = 0


# Grid-less pallas_call, no tensor inputs, single (1,) int32 scalar output in
# SMEM. Fixed cost is just the custom-call launch; no vector DMA is generated.
_flag_call = pl.pallas_call(
    _zero_flag_kernel,
    out_shape=jax.ShapeDtypeStruct((1,), jnp.int32),
    out_specs=pl.BlockSpec(memory_space=pltpu.MemorySpace.SMEM),
)


def _nollm_backbone_forward(inputs_embeds: jax.Array):
    """Pallas equivalent of NoLLM_Backbone.forward.

    Returns (last_hidden_state, zero_scalar) where last_hidden_state IS
    inputs_embeds (no copy, no HBM read/write) and zero_scalar mirrors
    torch.tensor(0).
    """
    flag = _flag_call()[0]  # shape (), int32, value 0
    if jax.config.jax_enable_x64:
        # torch.tensor(0) defaults to int64; match it when x64 is enabled.
        flag = flag.astype(jnp.int64)
    # Pure passthrough: returning the input directly costs nothing; XLA keeps
    # the output aliased to the parameter buffer. This is the reviewed top
    # optimization (a copy kernel here would spend 2x tensor-size HBM traffic
    # to implement "return the input unchanged").
    return inputs_embeds, flag


# jit so the passthrough output stays a zero-copy alias of the input buffer
# and the flag kernel is fused into a single executable.
nollm_backbone_forward = jax.jit(_nollm_backbone_forward)


if __name__ == "__main__":
    key = jax.random.PRNGKey(0)
    B, L, D = 2, 8, 32  # small shapes consistent with an embeddings tensor
    inputs_embeds = jax.random.normal(key, (B, L, D), dtype=jnp.float32)

    hidden, flag = nollm_backbone_forward(inputs_embeds)
    jax.block_until_ready(hidden)
    jax.block_until_ready(flag)

    assert hidden.shape == inputs_embeds.shape
    assert hidden.dtype == inputs_embeds.dtype
    assert bool(jnp.array_equal(hidden, inputs_embeds))
    assert flag.shape == ()
    assert int(flag) == 0

    print("KERNEL_OK")
</pallas_src>

<mosaic_0001>
module attributes {stable_mosaic.version = 11 : i64} {
  func.func @_zero_flag_kernel(%arg0: memref<1xi32, #tpu.memory_space<smem>>) attributes {dimension_semantics = [], scalar_prefetch = 0 : i64, scratch_operands = 0 : i64, tpu.core_type = #tpu.core_type<tc>} {
    %c0_i32 = arith.constant 0 : i32
    %c0 = arith.constant 0 : index
    %0 = memref.load %arg0[%c0] : memref<1xi32, #tpu.memory_space<smem>>
    memref.store %c0_i32, %arg0[%c0] : memref<1xi32, #tpu.memory_space<smem>>
    return
  }
}

</mosaic_0001>

<bundles_post_ra>
// kernel: _nollm_backbone_forward.1
= control target key start
LH: loop header
LB: loop body
LE: loop exit
PB: predicated region body
PF: predicated region fallthrough
CT: control target
= control target key end

     0   :  { %5 = vsyncpa [#allocation3], 0  ;;  %s33_s3 = smov 0   ;;  %s34_s4 = smov [#allocation2]   ;;  %s43_s0 = inlined_call_operand.hbm [shape: s32[1], index: 0, kind: output, shape index: {}]  }
   0x1   :  { %7 = sst [smem:[#allocation2]] %s33_s3 }
   0x2   :  { %15 = dma.smem_to_hbm %s34_s4, 16, %s43_s0, [#allocation3]  }
   0x3   :  { %31 = dma.done.wait [#allocation3], 16  }
   0x4   :  { %32 = vsyncadd [#allocation3], 4294967280 }
   0x5   :  { %19 = sfence }
   0x6   :  { %20 = vsyncpa [#allocation3], 1 }

</bundles_post_ra>
